<compile_context>
chip_gen: v7x
topology: tpu7x:2x2x1
jax: 0.10.0
libtpu: 0.0.40
codegen_flags: <defaults>
</compile_context>

<pallas_src>
import functools

import jax
import jax.numpy as jnp
from jax.experimental import pallas as pl
from jax.experimental.pallas import tpu as pltpu

GAMMA = 2.0
ALPHA = 0.25


def _round_up(x, m):
    return (x + m - 1) // m * m


def _focal_loss_kernel(pred_ref, tgt_ref, out_ref, *, gamma, alpha,
                       n_rows, n_cols, block_rows, block_cols):
    """Per-block focal loss + in-register (8, 128) partial reduction."""
    x = pred_ref[...].astype(jnp.float32)
    t = tgt_ref[...].astype(jnp.float32)     # cast only here (native dtype on HBM)

    # One exp per element, reused by sigmoid and the stable-BCE log term (EUP).
    e = jnp.exp(-jnp.abs(x))                  # exp(-|x|)
    inv = 1.0 / (1.0 + e)                     # sigmoid(|x|)  (exact; approx opt-in on v7x)
    p = jnp.where(x >= 0.0, inv, 1.0 - inv)   # sigmoid(x)

    # Algebraic folding (same math as the PyTorch module, fewer VPU ops):
    #   pt    = (1-p)*t + p*(1-t)   == p + t - 2*p*t
    #   coeff = a*t + (1-a)*(1-t)   == (1-a) + (2a-1)*t
    pt = p + t - 2.0 * (p * t)
    coeff = (1.0 - alpha) + (2.0 * alpha - 1.0) * t
    if gamma == 2.0:
        pt_g = pt * pt                        # avoid float pow (exp+log on EUP)
    elif gamma == 1.0:
        pt_g = pt
    else:
        pt_g = pt ** gamma

    # Numerically stable binary_cross_entropy_with_logits, reduction='none'.
    bce = jnp.maximum(x, 0.0) - x * t + jnp.log1p(e)
    loss = bce * coeff * pt_g

    # Exact ragged-edge masking (only emitted when the shape is unaligned).
    need_row_mask = (n_rows % block_rows) != 0
    need_col_mask = (n_cols % block_cols) != 0
    if need_row_mask or need_col_mask:
        valid = None
        if need_row_mask:
            rows = jax.lax.broadcasted_iota(jnp.int32, loss.shape, 0)
            valid = rows < (n_rows - pl.program_id(0) * block_rows)
        if need_col_mask:
            cols = jax.lax.broadcasted_iota(jnp.int32, loss.shape, 1)
            cmask = cols < (n_cols - pl.program_id(1) * block_cols)
            valid = cmask if valid is None else (valid & cmask)
        loss = jnp.where(valid, loss, 0.0)

    # Lane-group fold: static 128-wide, vreg-aligned column slices -> VPU adds.
    acc = loss[:, 0:128]
    for k in range(1, block_cols // 128):
        acc = acc + loss[:, k * 128:(k + 1) * 128]
    # Sublane fold: (block_rows, 128) -> (8, 128), still vreg-aligned.
    part = acc.reshape(block_rows // 8, 8, 128).sum(axis=0)
    out_ref[...] = part[None, None]           # (1, 1, 8, 128), lane-dense store


def focal_loss(pred, target, *, gamma=GAMMA, alpha=ALPHA,
               row_tile=None, col_tile=None):
    """Pallas-backed sigmoid focal loss. pred/target: (N, C). Returns scalar f32."""
    N, C = pred.shape

    pred_bytes = jnp.dtype(pred.dtype).itemsize
    tgt_bytes = jnp.dtype(target.dtype).itemsize
    # Sublane granularity for the narrowest streamed dtype
    # (8 for f32, 16 for bf16, 32 for int8/bool).
    sub = max(8, 32 // pred_bytes, 32 // tgt_bytes)

    # Column tile: lane-aligned, capped at 2048 lanes.
    if col_tile is None:
        col_tile = min(_round_up(C, 128), 2048)
    col_tile = _round_up(col_tile, 128)

    # Row tile: ~4 MiB per input block (sized by the real pred itemsize),
    # never larger than the (sublane-rounded) batch.
    if row_tile is None:
        target_block_bytes = 4 * 1024 * 1024
        rt = max(sub, (target_block_bytes // (col_tile * pred_bytes)) // sub * sub)
        row_tile = min(rt, _round_up(N, sub))
    row_tile = max(sub, _round_up(row_tile, sub))

    n_r = pl.cdiv(N, row_tile)
    n_c = pl.cdiv(C, col_tile)

    kernel = functools.partial(
        _focal_loss_kernel, gamma=gamma, alpha=alpha,
        n_rows=N, n_cols=C, block_rows=row_tile, block_cols=col_tile)

    partials = pl.pallas_call(
        kernel,
        out_shape=jax.ShapeDtypeStruct((n_r, n_c, 8, 128), jnp.float32),
        grid_spec=pltpu.PrefetchScalarGridSpec(
            num_scalar_prefetch=0,
            grid=(n_r, n_c),
            in_specs=[
                pl.BlockSpec((row_tile, col_tile), lambda i, j: (i, j)),
                pl.BlockSpec((row_tile, col_tile), lambda i, j: (i, j)),
            ],
            out_specs=pl.BlockSpec((1, 1, 8, 128), lambda i, j: (i, j, 0, 0)),
        ),
        compiler_params=pltpu.CompilerParams(
            dimension_semantics=("parallel", "parallel"),
            vmem_limit_bytes=40 * 1024 * 1024,
        ),
    )(pred, target)

    # loss.sum(dim=1).mean() for a 2-D input == total_sum / N
    return jnp.sum(partials) / jnp.float32(N)


def _focal_loss_ref(pred, target, gamma=GAMMA, alpha=ALPHA):
    """Pure-JAX reference matching the PyTorch module."""
    p = jax.nn.sigmoid(pred)
    t = target.astype(pred.dtype)
    pt = (1 - p) * t + p * (1 - t)
    fw = (alpha * t + (1 - alpha) * (1 - t)) * (pt ** gamma)
    bce = jnp.maximum(pred, 0.0) - pred * t + jnp.log1p(jnp.exp(-jnp.abs(pred)))
    loss = bce * fw
    return loss.sum(axis=1).mean()


if __name__ == "__main__":
    key = jax.random.PRNGKey(0)
    k1, k2, k3, k4, k5, k6 = jax.random.split(key, 6)

    # Case 1: lane-aligned small shape (no masking path).
    N1, C1 = 16, 128
    pred1 = jax.random.normal(k1, (N1, C1), dtype=jnp.float32)
    tgt1 = (jax.random.uniform(k2, (N1, C1)) > 0.5).astype(jnp.float32)
    out1 = focal_loss(pred1, tgt1)
    jax.block_until_ready(out1)
    ref1 = _focal_loss_ref(pred1, tgt1)
    assert jnp.allclose(out1, ref1, rtol=1e-5, atol=1e-5), (out1, ref1)

    # Case 2: ragged shape exercising the in-kernel edge masking (no pad copies).
    N2, C2 = 13, 100
    pred2 = jax.random.normal(k3, (N2, C2), dtype=jnp.float32)
    tgt2 = (jax.random.uniform(k4, (N2, C2)) > 0.5).astype(jnp.float32)
    out2 = focal_loss(pred2, tgt2)
    jax.block_until_ready(out2)
    ref2 = _focal_loss_ref(pred2, tgt2)
    assert jnp.allclose(out2, ref2, rtol=1e-5, atol=1e-5), (out2, ref2)

    # Case 3: narrow (int8) target streamed natively, cast only in-kernel.
    N3, C3 = 24, 200
    pred3 = jax.random.normal(k5, (N3, C3), dtype=jnp.float32)
    tgt3 = (jax.random.uniform(k6, (N3, C3)) > 0.5).astype(jnp.int8)
    out3 = focal_loss(pred3, tgt3)
    jax.block_until_ready(out3)
    ref3 = _focal_loss_ref(pred3, tgt3.astype(jnp.float32))
    assert jnp.allclose(out3, ref3, rtol=1e-5, atol=1e-5), (out3, ref3)

    print("KERNEL_OK")
</pallas_src>

<mosaic_0001>
module attributes {stable_mosaic.version = 11 : i64} {
  func.func @_focal_loss_kernel(%arg0: i32, %arg1: i32, %arg2: memref<16x128xf32, #tpu.memory_space<vmem>>, %arg3: memref<16x128xf32, #tpu.memory_space<vmem>>, %arg4: memref<1x1x8x128xf32, #tpu.memory_space<vmem>>) attributes {dimension_semantics = [#tpu.dimension_semantics<parallel>, #tpu.dimension_semantics<parallel>], iteration_bounds = array<i64: 1, 1>, scalar_prefetch = 0 : i64, scratch_operands = 0 : i64, tpu.core_type = #tpu.core_type<tc>, window_params = [{transform_indices = @transform_0, window_bounds = array<i64: 16, 128>}, {transform_indices = @transform_1, window_bounds = array<i64: 16, 128>}, {transform_indices = @transform_2, window_bounds = array<i64: 1, 1, 8, 128>}]} {
    %c0 = arith.constant 0 : index
    %c0_0 = arith.constant 0 : index
    %0 = vector.load %arg2[%c0, %c0_0] : memref<16x128xf32, #tpu.memory_space<vmem>>, vector<16x128xf32>
    %c0_1 = arith.constant 0 : index
    %c0_2 = arith.constant 0 : index
    %1 = vector.load %arg3[%c0_1, %c0_2] : memref<16x128xf32, #tpu.memory_space<vmem>>, vector<16x128xf32>
    %2 = math.absf %0 : vector<16x128xf32>
    %cst = arith.constant 0.000000e+00 : f32
    %3 = vector.broadcast %cst : f32 to vector<16x128xf32>
    %4 = arith.subf %3, %2 : vector<16x128xf32>
    %5 = math.exp %4 : vector<16x128xf32>
    %cst_3 = arith.constant 1.000000e+00 : f32
    %6 = vector.broadcast %cst_3 : f32 to vector<16x128xf32>
    %7 = arith.addf %6, %5 : vector<16x128xf32>
    %cst_4 = arith.constant 1.000000e+00 : f32
    %8 = vector.broadcast %cst_4 : f32 to vector<16x128xf32>
    %9 = arith.divf %8, %7 : vector<16x128xf32>
    %cst_5 = arith.constant 0.000000e+00 : f32
    %10 = vector.broadcast %cst_5 : f32 to vector<16x128xf32>
    %11 = arith.cmpf oge, %0, %10 : vector<16x128xf32>
    %cst_6 = arith.constant 1.000000e+00 : f32
    %12 = vector.broadcast %cst_6 : f32 to vector<16x128xf32>
    %13 = arith.subf %12, %9 : vector<16x128xf32>
    %14 = arith.select %11, %9, %13 : vector<16x128xi1>, vector<16x128xf32>
    %15 = arith.addf %14, %1 : vector<16x128xf32>
    %16 = arith.mulf %14, %1 : vector<16x128xf32>
    %cst_7 = arith.constant 2.000000e+00 : f32
    %17 = vector.broadcast %cst_7 : f32 to vector<16x128xf32>
    %18 = arith.mulf %17, %16 : vector<16x128xf32>
    %19 = arith.subf %15, %18 : vector<16x128xf32>
    %cst_8 = arith.constant -5.000000e-01 : f32
    %20 = vector.broadcast %cst_8 : f32 to vector<16x128xf32>
    %21 = arith.mulf %20, %1 : vector<16x128xf32>
    %cst_9 = arith.constant 7.500000e-01 : f32
    %22 = vector.broadcast %cst_9 : f32 to vector<16x128xf32>
    %23 = arith.addf %22, %21 : vector<16x128xf32>
    %24 = arith.mulf %19, %19 : vector<16x128xf32>
    %cst_10 = arith.constant 0.000000e+00 : f32
    %25 = vector.broadcast %cst_10 : f32 to vector<16x128xf32>
    %26 = arith.maximumf %0, %25 : vector<16x128xf32>
    %27 = arith.mulf %0, %1 : vector<16x128xf32>
    %28 = arith.subf %26, %27 : vector<16x128xf32>
    %29 = math.log1p %5 : vector<16x128xf32>
    %30 = arith.addf %28, %29 : vector<16x128xf32>
    %31 = arith.mulf %30, %23 : vector<16x128xf32>
    %32 = arith.mulf %31, %24 : vector<16x128xf32>
    %33 = vector.shape_cast %32 : vector<16x128xf32> to vector<2x8x128xf32>
    %cst_11 = arith.constant dense<0.000000e+00> : vector<8x128xf32>
    %34 = vector.multi_reduction <add>, %33, %cst_11 [0] : vector<2x8x128xf32> to vector<8x128xf32>
    %35 = vector.shape_cast %34 : vector<8x128xf32> to vector<1x1x8x128xf32>
    %c0_12 = arith.constant 0 : index
    %c0_13 = arith.constant 0 : index
    %c0_14 = arith.constant 0 : index
    %c0_15 = arith.constant 0 : index
    %36 = vector.load %arg4[%c0_12, %c0_13, %c0_14, %c0_15] : memref<1x1x8x128xf32, #tpu.memory_space<vmem>>, vector<1x1x8x128xf32>
    tpu.vector_store %arg4[%c0_12, %c0_13, %c0_14, %c0_15], %35 {strides = array<i32>} : memref<1x1x8x128xf32, #tpu.memory_space<vmem>>, vector<1x1x8x128xf32>,
    return
  }
  func.func @transform_0(%arg0: i32, %arg1: i32) -> (i32, i32) {
    %c0_i32 = arith.constant 0 : i32
    return %arg0, %arg1 : i32, i32
  }
  func.func @transform_1(%arg0: i32, %arg1: i32) -> (i32, i32) {
    %c0_i32 = arith.constant 0 : i32
    return %arg0, %arg1 : i32, i32
  }
  func.func @transform_2(%arg0: i32, %arg1: i32) -> (i32, i32, i32, i32) {
    %c0_i32 = arith.constant 0 : i32
    %c0_i32_0 = arith.constant 0 : i32
    %c0_i32_1 = arith.constant 0 : i32
    return %arg0, %arg1, %c0_i32, %c0_i32_0 : i32, i32, i32, i32
  }
}

</mosaic_0001>

<bundles_post_ra>
// kernel: tpu_custom_call.1
= control target key start
LH: loop header
LB: loop body
LE: loop exit
PB: predicated region body
PF: predicated region fallthrough
CT: control target
= control target key end

     0   :  { %7 = vsyncpa [#allocation3], 0  ;;  %s278_s0 = inlined_call_operand.hbm [shape: f32[16,128], index: 0, kind: input, shape index: {}]   ;;  %s279_s1 = inlined_call_operand.hbm [shape: f32[16,128], index: 1, kind: input, shape index: {}]   ;;  %s280_s2 = inlined_call_operand.hbm [shape: f32[1,1,8,128], index: 2, kind: output, shape index: {}]  }
   0x1   :  { %8 = vsyncpa [#allocation6], 0 }
   0x2   :  { %9 = vsyncpa [#allocation4], 0  ;;  %s215_s9 = smov [#allocation2]   ;;  %s143_s13 = scalar_lea.hbm %s278_s0, 256 }
   0x3   :  { %s15_s10 = sshll.u32 %s215_s9, 4  ;;  %p144_p0 = scmp.ne.s32.totalorder %s278_s0, %s143_s13  ;;  %s16_s10 = int_to_ptr.vmem [resolvable:$true] %s15_s10 }
   0x4   :  { %p147_p1 = scmp.lt.u32.totalorder %s143_s13, %s278_s0 }
   0x6   :  { %p149_p2 = pnand %p147_p1, %p144_p0 }
   0x8   :  { %152 = shalt.err (!%p149_p2)
}
   0x9   :  { %s153_s18 = scalar_lea.vmem %s16_s10, 256  ;;  %p158_p4 = scmp.lt.s32.totalorder %s16_s10, %s16_s10 }
   0xa   :  { %p154_p3 = scmp.ne.s32.totalorder %s16_s10, %s153_s18  ;;  %p159_p5 = scmp.lt.s32.totalorder %s153_s18, %s153_s18 }
   0xc   :  { %p160_p6 = por %p159_p5, %p158_p4 }
   0xe   :  { %p161_p7 = pnand %p160_p6, %p154_p3 }
  0x10   :  { %164 = shalt.err (!%p161_p7)
}
  0x11   :  { %s216_s19 = smov 128   ;;  %s217_s20 = smov 8  }
  0x12   :  { %21 = dma.hbm_to_vmem [thread:$0]  %s278_s0, 256, %s16_s10, [#allocation3], %s216_s19, %s216_s19, %s217_s20  }
  0x13   :  { %s218_s23 = smov [#allocation5]   ;;  %s165_s27 = scalar_lea.hbm %s279_s1, 256 }
  0x14   :  { %s27_s24 = sshll.u32 %s218_s23, 4  ;;  %p166_p8 = scmp.ne.s32.totalorder %s279_s1, %s165_s27  ;;  %s28_s24 = int_to_ptr.vmem [resolvable:$true] %s27_s24 }
  0x15   :  { %p169_p9 = scmp.lt.u32.totalorder %s165_s27, %s279_s1 }
  0x17   :  { %p171_p10 = pnand %p169_p9, %p166_p8 }
  0x19   :  { %174 = shalt.err (!%p171_p10)
}
  0x1a   :  { %s175_s4 = scalar_lea.vmem %s28_s24, 256  ;;  %p180_p12 = scmp.lt.s32.totalorder %s28_s24, %s28_s24 }
  0x1b   :  { %p176_p11 = scmp.ne.s32.totalorder %s28_s24, %s175_s4  ;;  %p181_p13 = scmp.lt.s32.totalorder %s175_s4, %s175_s4 }
  0x1d   :  { %p182_p0 = por %p181_p13, %p180_p12 }
  0x1f   :  { %p183_p1 = pnand %p182_p0, %p176_p11 }
  0x21   :  { %186 = shalt.err (!%p183_p1)
}
  0x22   :  { %33 = dma.hbm_to_vmem [thread:$0]  %s279_s1, 256, %s28_s24, [#allocation6], %s216_s19, %s216_s19, %s217_s20  }
  0x23   :  { %209 = dma.done.wait [#allocation3], 256  }
  0x24   :  { %210 = vsyncadd [#allocation3], 4294967040 }
  0x25   :  { %211 = dma.done.wait [#allocation6], 256  }
  0x26   :  { %212 = vsyncadd [#allocation6], 4294967040  ;;  %v40_v0 = vld [vmem:[#allocation2] sm:$0xff]  ;;  %v41_v1 = vld [vmem:[#allocation2 + $0x8] sm:$0xff]  ;;  %s219_s1 = smov [#allocation7]  }
  0x27   :  { %v44_v2 = vand.u32 2147483647, %v40_v0  ;;  %v45_v3 = vand.u32 2147483647, %v41_v1  ;;  %v42_v14 = vld [vmem:[#allocation5] sm:$0xff]  ;;  %v43_v15 = vld [vmem:[#allocation5 + $0x8] sm:$0xff] }
  0x28   :  { %v72_v16 = vmul.f32 -0.5, %v42_v14  ;;  %v78_v18 = vmax.f32 %v40_v0, 0.0  ;;  %v80_v19 = vmul.f32 %v42_v14, %v40_v0  ;;  %v79_v22 = vmax.f32 %v41_v1, 0.0  ;;  %s116_s6 = sshll.u32 %s219_s1, 4  ;;  %s117_s6 = int_to_ptr.vmem [resolvable:$true] %s116_s6 }
  0x29   :  { %v46_v4 = vsub.f32 0.0, %v44_v2  ;;  %v47_v5 = vsub.f32 0.0, %v45_v3  ;;  %v81_v23 = vmul.f32 %v43_v15, %v41_v1  ;;  %vm58_vm0 = vcmp.ge.f32.partialorder %v40_v0, 0.0  ;;  %s187_s7 = scalar_lea.vmem %s117_s6, 128  ;;  %p192_p3 = scmp.lt.s32.totalorder %s117_s6, %s117_s6 }
  0x2a   :  { %vm59_vm1 = vcmp.ge.f32.partialorder %v41_v1, 0.0  ;;  %v73_v28 = vmul.f32 -0.5, %v43_v15  ;;  %v74_v29 = vadd.f32 0.75, %v72_v16  ;;  %v82_v33 = vsub.f32 %v78_v18, %v80_v19  ;;  %p188_p2 = scmp.ne.s32.totalorder %s117_s6, %s187_s7  ;;  %p193_p4 = scmp.lt.s32.totalorder %s187_s7, %s187_s7 }
  0x2b   :  { %v48_v6 = vmul.f32 1.442695, %v46_v4  ;;  %v50_v7 = vmul.f32 1.442695, %v47_v5  ;;  %v83_v38 = vsub.f32 %v79_v22, %v81_v23 }
  0x2c   :  { %v75_v46 = vadd.f32 0.75, %v73_v28  ;;  %p194_p5 = por %p193_p4, %p192_p3 }
  0x2d   :  { %131 = vpow2.f32 %v48_v6 }
  0x2e   :  { %133 = vpow2.f32 %v50_v7  ;;  %p195_p6 = pnand %p194_p5, %p188_p2 }
  0x37   :  { %v132_v8 = vpop.eup %131 }
  0x38   :  { %v134_v9 = vpop.eup %133  ;;  %v52_v10 = vadd.f32 1.0, %v132_v8  ;;  %v87_v12 = vmul.f32 -0.5, %v132_v8  ;;  %v90_v20 = vand.u32 2147483647, %v132_v8 }
  0x39   :  { %v53_v11 = vadd.f32 1.0, %v134_v9  ;;  %v96_v13 = vmul.f32 -0.5, %v134_v9  ;;  %v99_v24 = vand.u32 2147483647, %v134_v9 }
  0x3a   :  { %135 = vrcp.f32 %v52_v10  ;;  %v88_v17 = vadd.f32 1.0, %v87_v12  ;;  %vm259_vm2 = vcmp.lt.f32.partialorder %v90_v20, 0.0004427343 }
  0x3b   :  { %137 = vrcp.f32 %v53_v11  ;;  %v97_v21 = vadd.f32 1.0, %v96_v13  ;;  %vm100_vm3 = vcmp.lt.f32.partialorder %v99_v24, 0.0004427343 }
  0x3c   :  { %139 = vlog2.f32 %v52_v10  ;;  %v89_v30 = vmul.f32 %v132_v8, %v88_v17 }
  0x3d   :  { %141 = vlog2.f32 %v53_v11  ;;  %v98_v35 = vmul.f32 %v134_v9, %v97_v21 }
  0x44   :  { %v136_v25 = vpop.eup %135 }
  0x45   :  { %v138_v26 = vpop.eup %137  ;;  %v60_v27 = vsub.f32 1.0, %v136_v25 }
  0x46   :  { %v140_v31 = vpop.eup %139  ;;  %v61_v32 = vsub.f32 1.0, %v138_v26 }
  0x47   :  { %v142_v36 = vpop.eup %141  ;;  %v62_v37 = vsel %vm58_vm0, %v136_v25, %v60_v27  ;;  %v86_v39 = vmul.f32 0.6931472, %v140_v31 }
  0x48   :  { %v63_v40 = vsel %vm59_vm1, %v138_v26, %v61_v32  ;;  %v64_v41 = vadd.f32 %v62_v37, %v42_v14  ;;  %v66_v42 = vmul.f32 %v62_v37, %v42_v14  ;;  %v95_v43 = vmul.f32 0.6931472, %v142_v36 }
  0x49   :  { %v65_v44 = vadd.f32 %v63_v40, %v43_v15  ;;  %v67_v45 = vmul.f32 %v63_v40, %v43_v15  ;;  %v92_v47 = vsel %vm259_vm2, %v89_v30, %v86_v39 }
  0x4a   :  { %v68_v48 = vmul.f32 2.0, %v66_v42  ;;  %v101_v49 = vsel %vm100_vm3, %v98_v35, %v95_v43  ;;  %v102_v50 = vadd.f32 %v92_v47, %v82_v33 }
  0x4b   :  { %v69_v51 = vmul.f32 2.0, %v67_v45  ;;  %v103_v52 = vadd.f32 %v101_v49, %v83_v38 }
  0x4c   :  { %v70_v53 = vsub.f32 %v64_v41, %v68_v48  ;;  %v104_v54 = vmul.f32 %v102_v50, %v74_v29 }
  0x4d   :  { %v71_v55 = vsub.f32 %v65_v44, %v69_v51  ;;  %v105_v56 = vmul.f32 %v103_v52, %v75_v46 }
  0x4e   :  { %v76_v57 = vmul.f32 %v70_v53, %v70_v53 }
  0x4f   :  { %v77_v58 = vmul.f32 %v71_v55, %v71_v55 }
  0x50   :  { %v106_v59 = vmul.f32 %v104_v54, %v76_v57 }
  0x51   :  { %v107_v60 = vmul.f32 %v105_v56, %v77_v58 }
  0x53   :  { %v108_v61 = vadd.f32 %v107_v60, %v106_v59 }
  0x55   :  { %109 = vst [vmem:[#allocation7] sm:$0xff] %v108_v61 }
  0x56   :  { %198 = shalt.err (!%p195_p6)
}
  0x57   :  { %s199_s10 = scalar_lea.hbm %s280_s2, 128 }
  0x58   :  { %p200_p7 = scmp.ne.s32.totalorder %s280_s2, %s199_s10  ;;  %p203_p8 = scmp.lt.u32.totalorder %s199_s10, %s280_s2 }
  0x5a   :  { %p205_p9 = pnand %p203_p8, %p200_p7 }
  0x5c   :  { %208 = shalt.err (!%p205_p9)
}
  0x5d   :  { %119 = dma.vmem_to_hbm [thread:$0]  %s117_s6, 128, %s280_s2, [#allocation4]  }
  0x5e   :  { %213 = dma.done.wait [#allocation4], 128  }
  0x5f   :  { %214 = vsyncadd [#allocation4], 4294967168 }
  0x60   :  { %123 = vsyncpa [#allocation3], 1 }
  0x61   :  { %124 = vsyncpa [#allocation6], 1 }
  0x62   :  { %125 = vsyncpa [#allocation4], 1 }

</bundles_post_ra>
